<compile_context>
chip_gen: v5e
topology: v5e:2x2
jax: 0.10.0
libtpu: 0.0.40
codegen_flags: <defaults>
</compile_context>

<pallas_src>
import numpy as np
import jax
import jax.numpy as jnp
from jax.experimental import pallas as pl
from jax.experimental.pallas import tpu as pltpu


def _gaussian_1d(scale):
    """Replicates AntiAliasInterpolation2d.__init__ (separable 1-D taps, normalized)."""
    sigma = (1.0 / scale - 1.0) / 2.0
    ksize = 2 * round(sigma * 4) + 1
    mean = (ksize - 1) / 2.0
    coords = np.arange(ksize, dtype=np.float64)
    g = np.exp(-((coords - mean) ** 2) / (2.0 * sigma ** 2))
    g = g / g.sum()  # outer(g, g) == normalized 2-D kernel of the reference module
    return g, int(ksize)


def _band_matrices(scale, H, W):
    """Banded tap matrices with zero-padding and the downsample stride folded in.

    out[ho, wo] = sum_{r,c} Av[ho, r] * x[r, c] * Ah[c, wo]
                = sum_{i,j} g[i] g[j] x[ho*s + i - ka, wo*s + j - ka]   (zero outside x)
    which is exactly: pad(ka), cross-correlate with outer(g, g), then [::s, ::s].
    """
    g, K = _gaussian_1d(scale)
    ka = K // 2
    s = int(1.0 / scale)
    H_out = -(-H // s)
    W_out = -(-W // s)

    Av = np.zeros((H_out, H), np.float32)
    for ho in range(H_out):
        for r in range(H):
            i = r - ho * s + ka
            if 0 <= i < K:
                Av[ho, r] = g[i]

    Ah = np.zeros((W, W_out), np.float32)
    for wo in range(W_out):
        for c in range(W):
            j = c - wo * s + ka
            if 0 <= j < K:
                Ah[c, wo] = g[j]

    return Av, Ah, H_out, W_out


def _choose_plane_batch(n_planes, H, W, H_out, W_out):
    """Largest divisor of n_planes whose double-buffered block fits a safe VMEM budget."""
    per_plane_bytes = 8 * (H * W + H_out * W_out)  # f32, x2 for double buffering
    budget = 8 * 1024 * 1024  # conservative: within default scoped VMEM on v5e/v6e/v7x
    p_max = max(1, budget // per_plane_bytes)
    p = 1
    for d in range(1, n_planes + 1):
        if n_planes % d == 0 and d <= p_max:
            p = d
    return p


def _make_pyramid_level_call(n_planes, P, H, W, H_out, W_out, dtype):
    """pallas_call computing out[p] = Av @ x[p] @ Ah for P planes per grid step (MXU)."""

    def kernel(x_ref, av_ref, ah_ref, o_ref):
        av = av_ref[...]  # (H_out, H) f32, resident taps
        ah = ah_ref[...]  # (W, W_out) f32, resident taps
        for p in range(P):  # statically unrolled, small P
            xp = x_ref[p].astype(jnp.float32)                              # (H, W)
            tmp = jnp.dot(xp, ah, preferred_element_type=jnp.float32)      # (H, W_out)
            o_ref[p] = jnp.dot(av, tmp,
                               preferred_element_type=jnp.float32).astype(o_ref.dtype)

    flops = 2 * n_planes * (H * W * W_out + H_out * H * W_out)
    bytes_accessed = 4 * (n_planes * H * W + n_planes * H_out * W_out
                          + H_out * H + W * W_out)

    # TODO(synk): for very small W_out (<128) the output store is lane-masked; a
    # lane-dense repack of the pyramid level would further speed up the store path.
    return pl.pallas_call(
        kernel,
        out_shape=jax.ShapeDtypeStruct((n_planes, H_out, W_out), dtype),
        grid=(n_planes // P,),
        in_specs=[
            pl.BlockSpec((P, H, W), lambda i: (i, 0, 0)),
            pl.BlockSpec((H_out, H), lambda i: (0, 0)),
            pl.BlockSpec((W, W_out), lambda i: (0, 0)),
        ],
        out_specs=pl.BlockSpec((P, H_out, W_out), lambda i: (i, 0, 0)),
        compiler_params=pltpu.CompilerParams(
            dimension_semantics=("parallel",)),
        cost_estimate=pl.CostEstimate(
            flops=int(flops), transcendentals=0, bytes_accessed=int(bytes_accessed)),
    )


def anti_alias_interpolation(x, scale):
    """Pallas equivalent of AntiAliasInterpolation2d.forward (NCHW input)."""
    if scale == 1.0:
        return x  # exact PyTorch behavior: identity, no conv
    N, C, H, W = x.shape
    Av, Ah, H_out, W_out = _band_matrices(scale, H, W)
    n_planes = N * C
    P = _choose_plane_batch(n_planes, H, W, H_out, W_out)

    xf = x.reshape(n_planes, H, W)
    call = _make_pyramid_level_call(n_planes, P, H, W, H_out, W_out, x.dtype)
    out = call(xf, jnp.asarray(Av), jnp.asarray(Ah))
    return out.reshape(N, C, H_out, W_out)


def image_pyramide(x, scales):
    """Pallas equivalent of ImagePyramide.forward: dict of downsampled predictions."""
    out_dict = {}
    for scale in scales:
        # key = str(scale).replace('.', '-') then '-'->'.' round-trips to str(scale)
        out_dict['prediction_' + str(scale)] = anti_alias_interpolation(x, scale)
    return out_dict


def _reference(x, scales):
    """Pure-JAX reference (lax depthwise conv + strided slice) mirroring PyTorch semantics."""
    out = {}
    C = x.shape[1]
    for scale in scales:
        key = 'prediction_' + str(scale)
        if scale == 1.0:
            out[key] = x
            continue
        g, K = _gaussian_1d(scale)
        k2 = np.outer(g, g).astype(np.float32)
        ka = K // 2
        w = jnp.tile(jnp.asarray(k2)[None, None], (C, 1, 1, 1))  # (C,1,K,K) depthwise
        y = jax.lax.conv_general_dilated(
            x, w, window_strides=(1, 1),
            padding=((ka, ka), (ka, ka)),
            feature_group_count=C,
            dimension_numbers=('NCHW', 'OIHW', 'NCHW'))
        s = int(1.0 / scale)
        out[key] = y[:, :, ::s, ::s]
    return out


if __name__ == "__main__":
    key = jax.random.PRNGKey(0)
    # Small NCHW input consistent with the module (num_channels=3 default).
    x = jax.random.normal(key, (2, 3, 16, 16), dtype=jnp.float32)
    scales = [1.0, 0.5, 0.25]

    out = image_pyramide(x, scales)
    out = {k: jax.block_until_ready(v) for k, v in out.items()}

    ref = _reference(x, scales)
    for k in out:
        np.testing.assert_allclose(np.asarray(out[k]), np.asarray(ref[k]),
                                   rtol=1e-5, atol=1e-5)

    print("KERNEL_OK")
</pallas_src>

<mosaic_0001>
module attributes {stable_mosaic.version = 11 : i64} {
  func.func @kernel(%arg0: i32, %arg1: memref<6x16x16xf32, #tpu.memory_space<vmem>>, %arg2: memref<8x16xf32, #tpu.memory_space<vmem>>, %arg3: memref<16x8xf32, #tpu.memory_space<vmem>>, %arg4: memref<6x8x8xf32, #tpu.memory_space<vmem>>) attributes {dimension_semantics = [#tpu.dimension_semantics<parallel>], iteration_bounds = array<i64: 1>, scalar_prefetch = 0 : i64, scratch_operands = 0 : i64, tpu.core_type = #tpu.core_type<tc>, window_params = [{transform_indices = @transform_0, window_bounds = array<i64: 6, 16, 16>}, {pipeline_mode = #tpu.pipeline_mode<synchronous>, transform_indices = @transform_1, window_bounds = array<i64: 8, 16>}, {pipeline_mode = #tpu.pipeline_mode<synchronous>, transform_indices = @transform_2, window_bounds = array<i64: 16, 8>}, {transform_indices = @transform_3, window_bounds = array<i64: 6, 8, 8>}]} {
    %c0 = arith.constant 0 : index
    %c0_0 = arith.constant 0 : index
    %0 = vector.load %arg2[%c0, %c0_0] : memref<8x16xf32, #tpu.memory_space<vmem>>, vector<8x16xf32>
    %c0_1 = arith.constant 0 : index
    %c0_2 = arith.constant 0 : index
    %1 = vector.load %arg3[%c0_1, %c0_2] : memref<16x8xf32, #tpu.memory_space<vmem>>, vector<16x8xf32>
    %c0_3 = arith.constant 0 : index
    %c0_4 = arith.constant 0 : index
    %c0_5 = arith.constant 0 : index
    %2 = vector.load %arg1[%c0_3, %c0_4, %c0_5] : memref<6x16x16xf32, #tpu.memory_space<vmem>>, vector<1x16x16xf32>
    %3 = vector.shape_cast %2 : vector<1x16x16xf32> to vector<16x16xf32>
    %cst = arith.constant dense<0.000000e+00> : vector<16x8xf32>
    %4 = tpu.matmul %3, %1, %cst {dimension_numbers = #tpu.dot_dimension_numbers<[1], [0], [0], [1], [0, 0, 1, 1], [], []>} : vector<16x16xf32>, vector<16x8xf32>, vector<16x8xf32> -> vector<16x8xf32>
    %cst_6 = arith.constant dense<0.000000e+00> : vector<8x8xf32>
    %5 = tpu.matmul %0, %4, %cst_6 {dimension_numbers = #tpu.dot_dimension_numbers<[1], [0], [0], [1], [0, 0, 1, 1], [], []>} : vector<8x16xf32>, vector<16x8xf32>, vector<8x8xf32> -> vector<8x8xf32>
    %c0_7 = arith.constant 0 : index
    %c0_8 = arith.constant 0 : index
    %c0_9 = arith.constant 0 : index
    %6 = vector.load %arg4[%c0_7, %c0_8, %c0_9] : memref<6x8x8xf32, #tpu.memory_space<vmem>>, vector<1x8x8xf32>
    %7 = vector.shape_cast %6 : vector<1x8x8xf32> to vector<8x8xf32>
    %8 = vector.shape_cast %5 : vector<8x8xf32> to vector<1x8x8xf32>
    tpu.vector_store %arg4[%c0_7, %c0_8, %c0_9], %8 {strides = array<i32>} : memref<6x8x8xf32, #tpu.memory_space<vmem>>, vector<1x8x8xf32>,
    %c1 = arith.constant 1 : index
    %c0_10 = arith.constant 0 : index
    %c0_11 = arith.constant 0 : index
    %9 = vector.load %arg1[%c1, %c0_10, %c0_11] : memref<6x16x16xf32, #tpu.memory_space<vmem>>, vector<1x16x16xf32>
    %10 = vector.shape_cast %9 : vector<1x16x16xf32> to vector<16x16xf32>
    %cst_12 = arith.constant dense<0.000000e+00> : vector<16x8xf32>
    %11 = tpu.matmul %10, %1, %cst_12 {dimension_numbers = #tpu.dot_dimension_numbers<[1], [0], [0], [1], [0, 0, 1, 1], [], []>} : vector<16x16xf32>, vector<16x8xf32>, vector<16x8xf32> -> vector<16x8xf32>
    %cst_13 = arith.constant dense<0.000000e+00> : vector<8x8xf32>
    %12 = tpu.matmul %0, %11, %cst_13 {dimension_numbers = #tpu.dot_dimension_numbers<[1], [0], [0], [1], [0, 0, 1, 1], [], []>} : vector<8x16xf32>, vector<16x8xf32>, vector<8x8xf32> -> vector<8x8xf32>
    %c1_14 = arith.constant 1 : index
    %c0_15 = arith.constant 0 : index
    %c0_16 = arith.constant 0 : index
    %13 = vector.load %arg4[%c1_14, %c0_15, %c0_16] : memref<6x8x8xf32, #tpu.memory_space<vmem>>, vector<1x8x8xf32>
    %14 = vector.shape_cast %13 : vector<1x8x8xf32> to vector<8x8xf32>
    %15 = vector.shape_cast %12 : vector<8x8xf32> to vector<1x8x8xf32>
    tpu.vector_store %arg4[%c1_14, %c0_15, %c0_16], %15 {strides = array<i32>} : memref<6x8x8xf32, #tpu.memory_space<vmem>>, vector<1x8x8xf32>,
    %c2 = arith.constant 2 : index
    %c0_17 = arith.constant 0 : index
    %c0_18 = arith.constant 0 : index
    %16 = vector.load %arg1[%c2, %c0_17, %c0_18] : memref<6x16x16xf32, #tpu.memory_space<vmem>>, vector<1x16x16xf32>
    %17 = vector.shape_cast %16 : vector<1x16x16xf32> to vector<16x16xf32>
    %cst_19 = arith.constant dense<0.000000e+00> : vector<16x8xf32>
    %18 = tpu.matmul %17, %1, %cst_19 {dimension_numbers = #tpu.dot_dimension_numbers<[1], [0], [0], [1], [0, 0, 1, 1], [], []>} : vector<16x16xf32>, vector<16x8xf32>, vector<16x8xf32> -> vector<16x8xf32>
    %cst_20 = arith.constant dense<0.000000e+00> : vector<8x8xf32>
    %19 = tpu.matmul %0, %18, %cst_20 {dimension_numbers = #tpu.dot_dimension_numbers<[1], [0], [0], [1], [0, 0, 1, 1], [], []>} : vector<8x16xf32>, vector<16x8xf32>, vector<8x8xf32> -> vector<8x8xf32>
    %c2_21 = arith.constant 2 : index
    %c0_22 = arith.constant 0 : index
    %c0_23 = arith.constant 0 : index
    %20 = vector.load %arg4[%c2_21, %c0_22, %c0_23] : memref<6x8x8xf32, #tpu.memory_space<vmem>>, vector<1x8x8xf32>
    %21 = vector.shape_cast %20 : vector<1x8x8xf32> to vector<8x8xf32>
    %22 = vector.shape_cast %19 : vector<8x8xf32> to vector<1x8x8xf32>
    tpu.vector_store %arg4[%c2_21, %c0_22, %c0_23], %22 {strides = array<i32>} : memref<6x8x8xf32, #tpu.memory_space<vmem>>, vector<1x8x8xf32>,
    %c3 = arith.constant 3 : index
    %c0_24 = arith.constant 0 : index
    %c0_25 = arith.constant 0 : index
    %23 = vector.load %arg1[%c3, %c0_24, %c0_25] : memref<6x16x16xf32, #tpu.memory_space<vmem>>, vector<1x16x16xf32>
    %24 = vector.shape_cast %23 : vector<1x16x16xf32> to vector<16x16xf32>
    %cst_26 = arith.constant dense<0.000000e+00> : vector<16x8xf32>
    %25 = tpu.matmul %24, %1, %cst_26 {dimension_numbers = #tpu.dot_dimension_numbers<[1], [0], [0], [1], [0, 0, 1, 1], [], []>} : vector<16x16xf32>, vector<16x8xf32>, vector<16x8xf32> -> vector<16x8xf32>
    %cst_27 = arith.constant dense<0.000000e+00> : vector<8x8xf32>
    %26 = tpu.matmul %0, %25, %cst_27 {dimension_numbers = #tpu.dot_dimension_numbers<[1], [0], [0], [1], [0, 0, 1, 1], [], []>} : vector<8x16xf32>, vector<16x8xf32>, vector<8x8xf32> -> vector<8x8xf32>
    %c3_28 = arith.constant 3 : index
    %c0_29 = arith.constant 0 : index
    %c0_30 = arith.constant 0 : index
    %27 = vector.load %arg4[%c3_28, %c0_29, %c0_30] : memref<6x8x8xf32, #tpu.memory_space<vmem>>, vector<1x8x8xf32>
    %28 = vector.shape_cast %27 : vector<1x8x8xf32> to vector<8x8xf32>
    %29 = vector.shape_cast %26 : vector<8x8xf32> to vector<1x8x8xf32>
    tpu.vector_store %arg4[%c3_28, %c0_29, %c0_30], %29 {strides = array<i32>} : memref<6x8x8xf32, #tpu.memory_space<vmem>>, vector<1x8x8xf32>,
    %c4 = arith.constant 4 : index
    %c0_31 = arith.constant 0 : index
    %c0_32 = arith.constant 0 : index
    %30 = vector.load %arg1[%c4, %c0_31, %c0_32] : memref<6x16x16xf32, #tpu.memory_space<vmem>>, vector<1x16x16xf32>
    %31 = vector.shape_cast %30 : vector<1x16x16xf32> to vector<16x16xf32>
    %cst_33 = arith.constant dense<0.000000e+00> : vector<16x8xf32>
    %32 = tpu.matmul %31, %1, %cst_33 {dimension_numbers = #tpu.dot_dimension_numbers<[1], [0], [0], [1], [0, 0, 1, 1], [], []>} : vector<16x16xf32>, vector<16x8xf32>, vector<16x8xf32> -> vector<16x8xf32>
    %cst_34 = arith.constant dense<0.000000e+00> : vector<8x8xf32>
    %33 = tpu.matmul %0, %32, %cst_34 {dimension_numbers = #tpu.dot_dimension_numbers<[1], [0], [0], [1], [0, 0, 1, 1], [], []>} : vector<8x16xf32>, vector<16x8xf32>, vector<8x8xf32> -> vector<8x8xf32>
    %c4_35 = arith.constant 4 : index
    %c0_36 = arith.constant 0 : index
    %c0_37 = arith.constant 0 : index
    %34 = vector.load %arg4[%c4_35, %c0_36, %c0_37] : memref<6x8x8xf32, #tpu.memory_space<vmem>>, vector<1x8x8xf32>
    %35 = vector.shape_cast %34 : vector<1x8x8xf32> to vector<8x8xf32>
    %36 = vector.shape_cast %33 : vector<8x8xf32> to vector<1x8x8xf32>
    tpu.vector_store %arg4[%c4_35, %c0_36, %c0_37], %36 {strides = array<i32>} : memref<6x8x8xf32, #tpu.memory_space<vmem>>, vector<1x8x8xf32>,
    %c5 = arith.constant 5 : index
    %c0_38 = arith.constant 0 : index
    %c0_39 = arith.constant 0 : index
    %37 = vector.load %arg1[%c5, %c0_38, %c0_39] : memref<6x16x16xf32, #tpu.memory_space<vmem>>, vector<1x16x16xf32>
    %38 = vector.shape_cast %37 : vector<1x16x16xf32> to vector<16x16xf32>
    %cst_40 = arith.constant dense<0.000000e+00> : vector<16x8xf32>
    %39 = tpu.matmul %38, %1, %cst_40 {dimension_numbers = #tpu.dot_dimension_numbers<[1], [0], [0], [1], [0, 0, 1, 1], [], []>} : vector<16x16xf32>, vector<16x8xf32>, vector<16x8xf32> -> vector<16x8xf32>
    %cst_41 = arith.constant dense<0.000000e+00> : vector<8x8xf32>
    %40 = tpu.matmul %0, %39, %cst_41 {dimension_numbers = #tpu.dot_dimension_numbers<[1], [0], [0], [1], [0, 0, 1, 1], [], []>} : vector<8x16xf32>, vector<16x8xf32>, vector<8x8xf32> -> vector<8x8xf32>
    %c5_42 = arith.constant 5 : index
    %c0_43 = arith.constant 0 : index
    %c0_44 = arith.constant 0 : index
    %41 = vector.load %arg4[%c5_42, %c0_43, %c0_44] : memref<6x8x8xf32, #tpu.memory_space<vmem>>, vector<1x8x8xf32>
    %42 = vector.shape_cast %41 : vector<1x8x8xf32> to vector<8x8xf32>
    %43 = vector.shape_cast %40 : vector<8x8xf32> to vector<1x8x8xf32>
    tpu.vector_store %arg4[%c5_42, %c0_43, %c0_44], %43 {strides = array<i32>} : memref<6x8x8xf32, #tpu.memory_space<vmem>>, vector<1x8x8xf32>,
    return
  }
  func.func @transform_0(%arg0: i32) -> (i32, i32, i32) {
    %c0_i32 = arith.constant 0 : i32
    %c0_i32_0 = arith.constant 0 : i32
    %c0_i32_1 = arith.constant 0 : i32
    return %arg0, %c0_i32, %c0_i32_0 : i32, i32, i32
  }
  func.func @transform_1(%arg0: i32) -> (i32, i32) {
    %c0_i32 = arith.constant 0 : i32
    %c0_i32_0 = arith.constant 0 : i32
    %c0_i32_1 = arith.constant 0 : i32
    return %c0_i32, %c0_i32_0 : i32, i32
  }
  func.func @transform_2(%arg0: i32) -> (i32, i32) {
    %c0_i32 = arith.constant 0 : i32
    %c0_i32_0 = arith.constant 0 : i32
    %c0_i32_1 = arith.constant 0 : i32
    return %c0_i32, %c0_i32_0 : i32, i32
  }
  func.func @transform_3(%arg0: i32) -> (i32, i32, i32) {
    %c0_i32 = arith.constant 0 : i32
    %c0_i32_0 = arith.constant 0 : i32
    %c0_i32_1 = arith.constant 0 : i32
    return %arg0, %c0_i32, %c0_i32_0 : i32, i32, i32
  }
}

</mosaic_0001>

<bundles_post_ra>
// kernel: tpu_custom_call.1
= control target key start
LH: loop header
LB: loop body
LE: loop exit
PB: predicated region body
PF: predicated region fallthrough
CT: control target
= control target key end

     0   :  { %8 = vsyncpa [#allocation3], 0  ;;  %s523_s0 = inlined_call_operand.hbm [shape: f32[6,16,16], index: 0, kind: input, shape index: {}]   ;;  %s524_s1 = inlined_call_operand.vmem [shape: f32[8,16], index: 1, kind: input, shape index: {}]   ;;  %s525_s2 = inlined_call_operand.vmem [shape: f32[16,8], index: 2, kind: input, shape index: {}]   ;;  %s526_s3 = inlined_call_operand.hbm [shape: f32[6,8,8], index: 3, kind: output, shape index: {}]  }
   0x1   :  { %9 = vsyncpa [#allocation4], 0  ;;  %s14_s14 = sshll.u32 %s523_s0, 4  ;;  %s454_s15 = smov [#allocation2]   ;;  %s15_s14 = int_to_ptr.hbm [resolvable:$true] %s14_s14 }
   0x2   :  { %s16_s16 = sshll.u32 %s454_s15, 4  ;;  %s455_s17 = smov 128   ;;  %s17_s16 = int_to_ptr.vmem [resolvable:$true] %s16_s16 }
   0x3   :  { %s456_s18 = smov 8  }
   0x4   :  { %22 = dma.hbm_to_vmem [thread:$0]  %s15_s14, 1536, %s17_s16, [#allocation3], %s455_s17, %s455_s17, %s456_s18  }
   0x5   :  { %450 = dma.done.wait [#allocation3], 1536  }
   0x6   :  { %451 = vsyncadd [#allocation3], 4294965760  ;;  %v33_v0 = vld [vmem:[%s525_s2 + $0x8] sm:$0xff]  ;;  %v32_v1 = vld [vmem:[%s525_s2] sm:$0xff]  ;;  %vm36_vm0 = vcmask 130048   ;;  %vm89_vm1 = vcmask 64512  }
   0x7   :  { %57 = vmatpush.msra.mxu0 %v33_v0  ;;  %v34_v2 = vld [vmem:[#allocation2] sm:$0xff]  ;;  %114 = vmatpush.msra.mxu2 %v33_v0  ;;  %v92_v3 = vld [vmem:[#allocation2 + $0x10] sm:$0xff]  ;;  %v35_v4 = vld [vmem:[#allocation2 + $0x8] sm:$0xff]  ;;  %s367_s26 = sshll.u32 %s526_s3, 4  ;;  %s368_s26 = int_to_ptr.hbm [resolvable:$true] %s367_s26 }
   0x8   :  { %v93_v5 = vld [vmem:[#allocation2 + $0x18] sm:$0xff]  ;;  %v200_v6 = vld [vmem:[#allocation2 + $0x30] sm:$0xff]  ;;  %v31_v10 = vld [vmem:[%s524_s1] sm:$0xff]  ;;  %s457_s1 = smov [#allocation5]  }
   0x9   :  { %58 = vmatpush.msra.mxu0 %v32_v1  ;;  %115 = vmatpush.msra.mxu2 %v32_v1  ;;  %v201_v7 = vld [vmem:[#allocation2 + $0x38] sm:$0xff]  ;;  %v146_v11 = vld [vmem:[#allocation2 + $0x20] sm:$0xff]  ;;  %v147_v12 = vld [vmem:[#allocation2 + $0x28] sm:$0xff]  ;;  %s365_s23 = sshll.u32 %s457_s1, 4  ;;  %s366_s23 = int_to_ptr.vmem [resolvable:$true] %s365_s23 }
   0xa   :  { %380 = vmatmul.msk.f32.vlgmr.msra.gmra.mxu0 %vm36_vm0, %v34_v2  ;;  %383 = vmatmul.msk.f32.vlgmr.msra.gmra.mxu2 %vm36_vm0, %v92_v3  ;;  %v308_v17 = vld [vmem:[#allocation2 + $0x50] sm:$0xff]  ;;  %v309_v18 = vld [vmem:[#allocation2 + $0x58] sm:$0xff]  ;;  %v254_v22 = vld [vmem:[#allocation2 + $0x40] sm:$0xff] }
   0xb   :  { %222 = vmatpush.msrb.mxu0 %v33_v0  ;;  %v255_v23 = vld [vmem:[#allocation2 + $0x48] sm:$0xff] }
   0xd   :  { %223 = vmatpush.msrb.mxu0 %v32_v1 }
  0x12   :  { %381 = vmatmul.msk.f32.gmra.mxu0 %vm36_vm0, %v35_v4  ;;  %384 = vmatmul.msk.f32.gmra.mxu2 %vm36_vm0, %v93_v5 }
  0x1a   :  { %389 = vmatmul.msk.f32.vlgmr.msrb.gmra.mxu0 %vm36_vm0, %v200_v6 }
  0x22   :  { %390 = vmatmul.msk.f32.gmra.mxu0 %vm36_vm0, %v201_v7 }
  0x87   :  { %v60_v8 = vpop.f32.mrf.mxu0 }
  0x8d   :  { %v117_v13 = vpop.f32.mrf.mxu2 }
  0x8f   :  { %v63_v9 = vpop.f32.mrf.mxu0 }
  0x90   :  { %83 = vmatpush.msra.mxu1 %v63_v9 }
  0x92   :  { %84 = vmatpush.msra.mxu1 %v60_v8 }
  0x93   :  { %382 = vmatmul.msk.f32.vlgmr.msra.gmra.mxu1 %vm36_vm0, %v31_v10 }
  0x94   :  { %168 = vmatpush.msrb.mxu1 %v33_v0 }
  0x95   :  { %v120_v14 = vpop.f32.mrf.mxu2 }
  0x96   :  { %169 = vmatpush.msrb.mxu1 %v32_v1  ;;  %137 = vmatpush.msra.mxu3 %v120_v14 }
  0x97   :  { %v225_v15 = vpop.f32.mrf.mxu0 }
  0x98   :  { %138 = vmatpush.msra.mxu3 %v117_v13 }
  0x99   :  { %385 = vmatmul.msk.f32.vlgmr.msra.gmra.mxu3 %vm36_vm0, %v31_v10 }
  0x9b   :  { %386 = vmatmul.msk.f32.vlgmr.msrb.gmra.mxu1 %vm36_vm0, %v146_v11 }
  0x9f   :  { %v228_v16 = vpop.f32.mrf.mxu0 }
  0xa0   :  { %245 = vmatpush.msrb.mxu2 %v228_v16 }
  0xa2   :  { %246 = vmatpush.msrb.mxu2 %v225_v15 }
  0xa3   :  { %387 = vmatmul.msk.f32.gmra.mxu1 %vm36_vm0, %v147_v12  ;;  %391 = vmatmul.msk.f32.vlgmr.msrb.gmra.mxu2 %vm36_vm0, %v31_v10 }
  0xa4   :  { %330 = vmatpush.msra.mxu2 %v33_v0 }
  0xa6   :  { %331 = vmatpush.msra.mxu2 %v32_v1 }
  0xab   :  { %395 = vmatmul.msk.f32.vlgmr.msra.gmra.mxu2 %vm36_vm0, %v308_v17 }
  0xb3   :  { %396 = vmatmul.msk.f32.gmra.mxu2 %vm36_vm0, %v309_v18 }
 0x110   :  { %v86_v19 = vpop.f32.mrf.mxu1 }
 0x111   :  { %90 = vst.msk [vmem:[#allocation5] sm:$0xff] %vm89_vm1, %v86_v19 }
 0x118   :  { %v171_v20 = vpop.f32.mrf.mxu1 }
 0x11c   :  { %v140_v24 = vpop.f32.mrf.mxu3 }
 0x11d   :  { %144 = vst.msk [vmem:[#allocation5 + $0x8] sm:$0xff] %vm89_vm1, %v140_v24 }
 0x120   :  { %v174_v21 = vpop.f32.mrf.mxu1 }
 0x121   :  { %191 = vmatpush.msrb.mxu3 %v174_v21 }
 0x123   :  { %192 = vmatpush.msrb.mxu3 %v171_v20 }
 0x124   :  { %388 = vmatmul.msk.f32.vlgmr.msrb.gmra.mxu3 %vm36_vm0, %v31_v10 }
 0x125   :  { %276 = vmatpush.msra.mxu3 %v33_v0 }
 0x126   :  { %v248_v25 = vpop.f32.mrf.mxu2 }
 0x127   :  { %277 = vmatpush.msra.mxu3 %v32_v1  ;;  %252 = vst.msk [vmem:[#allocation5 + $0x18] sm:$0xff] %vm89_vm1, %v248_v25 }
 0x12c   :  { %392 = vmatmul.msk.f32.vlgmr.msra.gmra.mxu3 %vm36_vm0, %v254_v22 }
 0x12e   :  { %v333_v26 = vpop.f32.mrf.mxu2 }
 0x134   :  { %393 = vmatmul.msk.f32.gmra.mxu3 %vm36_vm0, %v255_v23 }
 0x136   :  { %v336_v27 = vpop.f32.mrf.mxu2 }
 0x137   :  { %353 = vmatpush.msra.mxu0 %v336_v27 }
 0x139   :  { %354 = vmatpush.msra.mxu0 %v333_v26 }
 0x13a   :  { %397 = vmatmul.msk.f32.vlgmr.msra.gmra.mxu0 %vm36_vm0, %v31_v10 }
 0x1a7   :  { %v194_v28 = vpop.f32.mrf.mxu3 }
 0x1a8   :  { %198 = vst.msk [vmem:[#allocation5 + $0x10] sm:$0xff] %vm89_vm1, %v194_v28 }
 0x1af   :  { %v279_v29 = vpop.f32.mrf.mxu3 }
 0x1b7   :  { %v282_v30 = vpop.f32.mrf.mxu3  ;;  %v356_v31 = vpop.f32.mrf.mxu0 }
 0x1b8   :  { %299 = vmatpush.msra.mxu1 %v282_v30  ;;  %360 = vst.msk [vmem:[#allocation5 + $0x28] sm:$0xff] %vm89_vm1, %v356_v31 }
 0x1ba   :  { %300 = vmatpush.msra.mxu1 %v279_v29 }
 0x1bb   :  { %394 = vmatmul.msk.f32.vlgmr.msra.gmra.mxu1 %vm36_vm0, %v31_v10 }
 0x238   :  { %v302_v32 = vpop.f32.mrf.mxu1 }
 0x239   :  { %306 = vst.msk [vmem:[#allocation5 + $0x20] sm:$0xff] %vm89_vm1, %v302_v32 }
 0x23a   :  { %373 = dma.vmem_to_hbm [thread:$0]  %s366_s23, 768, %s368_s26, [#allocation4], %s455_s17, %s455_s17, %s456_s18  }
 0x23b   :  { %452 = dma.done.wait [#allocation4], 768  }
 0x23c   :  { %453 = vsyncadd [#allocation4], 4294966528 }
 0x23d   :  { %378 = vsyncpa [#allocation3], 1 }
 0x23e   :  { %379 = vsyncpa [#allocation4], 1 }

</bundles_post_ra>
